<compile_context>
chip_gen: v6e
topology: v6e:2x2x1
jax: 0.10.0
libtpu: 0.0.40
codegen_flags: <defaults>
</compile_context>

<pallas_src>
import functools
import math

import jax
import jax.numpy as jnp
from jax.experimental import pallas as pl
from jax.experimental.pallas import tpu as pltpu


def _round_up(x, m):
    return ((x + m - 1) // m) * m


# ----------------------------------------------------------------------------
# Pallas kernels
# ----------------------------------------------------------------------------
def _proj_kernel(q_ref, k_ref,
                 qw1_ref, qb1_ref, qw2_ref, qb2_ref, qw3_ref, qb3_ref,
                 kw1_ref, kb1_ref, kw2_ref, kb2_ref,
                 qenc_ref, kenc_ref, *, n_att):
    """Fused key_proj + query_proj (+ norm stash) for one batch element.

    q_ref: (1, T1, Cm_pad) bf16   k_ref: (1, T2, Ct_pad) bf16  (channel-padded to 128)
    conv weights are im2col-flattened (K*Cin_pad, Cout_pad) bf16, biases (1, Cout_pad) f32.
    qenc_ref: (1, T1p, Cp) bf16   kenc_ref: (1, T2, Cp) bf16
    """
    cdt = qw1_ref.dtype  # MXU operand dtype (bf16)

    def mm(x, w_ref, b_ref, relu):
        acc = jnp.dot(x.astype(cdt), w_ref[...],
                      preferred_element_type=jnp.float32)
        acc = acc + b_ref[...]
        return jnp.maximum(acc, 0.0) if relu else acc

    def conv3_relu(x_c, w_ref, b_ref):
        # 'same'-zero-padded k=3 conv as one deep-K matmul on an im2col slab built
        # from three 128-lane-aligned taps.
        T, C = x_c.shape
        zrow = jnp.zeros((1, C), cdt)
        x_prev = jnp.concatenate([zrow, x_c[:T - 1]], axis=0)   # x[t-1]
        x_next = jnp.concatenate([x_c[1:], zrow], axis=0)       # x[t+1]
        slab = jnp.concatenate([x_prev, x_c, x_next], axis=-1)  # (T, 3*C)
        acc = jnp.dot(slab, w_ref[...], preferred_element_type=jnp.float32)
        return jnp.maximum(acc + b_ref[...], 0.0)

    def finish(enc_f32, is_query):
        # Round to bf16 once, compute |.|^2 from the rounded values (consistent with
        # the attention matmul), and stash the norm terms into two padded lanes so
        # the attention kernel's single MXU matmul yields -||q-k||^2/2 directly.
        enc = enc_f32.astype(cdt).astype(jnp.float32)
        nrm = jnp.sum(enc * enc, axis=-1, keepdims=True)        # padded lanes are 0
        lane = jax.lax.broadcasted_iota(jnp.int32, enc.shape, 1)
        if is_query:
            enc = jnp.where(lane == n_att, -0.5 * nrm, enc)
            enc = jnp.where(lane == n_att + 1, -0.5, enc)
        else:
            enc = jnp.where(lane == n_att, 1.0, enc)
            enc = jnp.where(lane == n_att + 1, nrm, enc)
        return enc.astype(cdt)

    # --- key_proj: conv(k=3) -> ReLU -> conv(k=1) ---
    kh = conv3_relu(k_ref[0], kw1_ref, kb1_ref)
    kenc = mm(kh, kw2_ref, kb2_ref, relu=False)
    kenc_ref[0] = finish(kenc, is_query=False)

    # --- query_proj: conv(k=3) -> ReLU -> conv(k=1) -> ReLU -> conv(k=1) ---
    qh = conv3_relu(q_ref[0], qw1_ref, qb1_ref)
    qh = mm(qh, qw2_ref, qb2_ref, relu=True)
    qenc = mm(qh, qw3_ref, qb3_ref, relu=False)
    qout = finish(qenc, is_query=True)
    T1p, T1 = qenc_ref.shape[1], qout.shape[0]
    if T1p > T1:  # zero-pad rows so every attention q-tile read is in-bounds
        qout = jnp.concatenate(
            [qout, jnp.zeros((T1p - T1, qout.shape[1]), cdt)], axis=0)
    qenc_ref[0] = qout


def _attn_kernel(q_ref, k_ref, attn_ref, logp_ref, *, temperature):
    """Distance + softmax for one (batch, T1-tile).

    q_ref: (1, tq, Cp) bf16   k_ref: (1, T2, Cp) bf16 (norm terms stashed in lanes)
    attn_ref / logp_ref: (1, 1, tq, T2)
    """
    q = q_ref[0]
    k = k_ref[0]
    # Fold 2*temperature into the MXU operand; with the stashed norm lanes the matmul
    # directly produces -temperature*||q-k||^2.
    q_scaled = (q.astype(jnp.float32) * (2.0 * temperature)).astype(q.dtype)
    attn_log = jax.lax.dot_general(q_scaled, k, (((1,), (1,)), ((), ())),
                                   preferred_element_type=jnp.float32)  # (tq, T2)
    logp_ref[0, 0] = attn_log.astype(logp_ref.dtype)

    # stable softmax over the text axis (== SafeSoftmax for finite inputs)
    m = jnp.max(attn_log, axis=-1, keepdims=True)
    e = jnp.exp(attn_log - m)
    s = jnp.sum(e, axis=-1, keepdims=True)
    attn_ref[0, 0] = (e * pl.reciprocal(s, approx=True)).astype(attn_ref.dtype)


# ----------------------------------------------------------------------------
# pallas_call wrappers
# ----------------------------------------------------------------------------
def _proj_call(p, q_btc, k_btc, T1p, n_att):
    B, T1, Cmp = q_btc.shape
    _, T2, Ctp = k_btc.shape
    Cp = p["qb3"].shape[1]
    enc_dtype = p["qw1"].dtype

    weights = [p["qw1"], p["qb1"], p["qw2"], p["qb2"], p["qw3"], p["qb3"],
               p["kw1"], p["kb1"], p["kw2"], p["kb2"]]
    w_specs = [pl.BlockSpec(w.shape, lambda b: (0, 0)) for w in weights]

    kern = functools.partial(_proj_kernel, n_att=int(n_att))
    # TODO(synk): at B==1 this grid has a single step (one TensorCore on v7x); the
    #             heavy attention stage below is still split across both cores.
    return pl.pallas_call(
        kern,
        grid=(B,),
        in_specs=[pl.BlockSpec((1, T1, Cmp), lambda b: (b, 0, 0)),
                  pl.BlockSpec((1, T2, Ctp), lambda b: (b, 0, 0))] + w_specs,
        out_specs=(pl.BlockSpec((1, T1p, Cp), lambda b: (b, 0, 0)),
                   pl.BlockSpec((1, T2, Cp), lambda b: (b, 0, 0))),
        out_shape=(jax.ShapeDtypeStruct((B, T1p, Cp), enc_dtype),
                   jax.ShapeDtypeStruct((B, T2, Cp), enc_dtype)),
        compiler_params=pltpu.CompilerParams(
            dimension_semantics=("parallel",),
            vmem_limit_bytes=64 * 1024 * 1024),  # explicit for v7x's 64 MiB VMEM
    )(q_btc, k_btc, *weights)


def _attn_call(q_enc, k_enc, temperature, tq, T1, attn_dtype, logprob_dtype):
    B, T1p, Cp = q_enc.shape
    T2 = k_enc.shape[1]
    kern = functools.partial(_attn_kernel, temperature=float(temperature))
    return pl.pallas_call(
        kern,
        grid=(B, T1p // tq),
        in_specs=[pl.BlockSpec((1, tq, Cp), lambda b, i: (b, i, 0)),
                  pl.BlockSpec((1, T2, Cp), lambda b, i: (b, 0, 0))],
        # Outputs are written UNPADDED (B,1,T1,T2): last dim is the full T2 block and
        # the trailing partial T1 tile (if any) is a masked write -> no post-kernel
        # slicing / extra HBM pass in the wrapper.
        out_specs=(pl.BlockSpec((1, 1, tq, T2), lambda b, i: (b, 0, i, 0)),
                   pl.BlockSpec((1, 1, tq, T2), lambda b, i: (b, 0, i, 0))),
        out_shape=(jax.ShapeDtypeStruct((B, 1, T1, T2), attn_dtype),
                   jax.ShapeDtypeStruct((B, 1, T1, T2), logprob_dtype)),
        compiler_params=pltpu.CompilerParams(
            dimension_semantics=("parallel", "parallel")),
    )(q_enc, k_enc)


# ----------------------------------------------------------------------------
# AlignmentEncoder.forward (mask=None, attn_prior=None, conditioning=None)
# ----------------------------------------------------------------------------
def alignment_encoder_forward(params, queries_bct1, keys_bct2, *, n_att,
                              temperature=0.0005, tq_max=512,
                              attn_dtype=jnp.bfloat16, logprob_dtype=jnp.float32):
    """queries: (B, C_mel, T1), keys: (B, C_text, T2) -> attn, attn_logprob (B,1,T1,T2)."""
    # TODO(synk): mask / attn_prior / conditioning branches not implemented.
    B, Cm, T1 = queries_bct1.shape
    _, Ct, T2 = keys_bct2.shape
    cdt = params["qw1"].dtype
    Cmp = _round_up(Cm, 128)
    Ctp = _round_up(Ct, 128)

    # NCW -> NTC, bf16 cast and 128-lane channel pad in one fused XLA pass: the proj
    # kernel ingests lane-dense bf16 with channels on the 128-lane axis.
    q = jnp.pad(jnp.transpose(queries_bct1, (0, 2, 1)).astype(cdt),
                ((0, 0), (0, 0), (0, Cmp - Cm)))
    k = jnp.pad(jnp.transpose(keys_bct2, (0, 2, 1)).astype(cdt),
                ((0, 0), (0, 0), (0, Ctp - Ct)))

    # T1 tiling for the attention stage.
    if T1 <= tq_max:
        tq = T1                              # single tile: full-dim block, no padding
    else:
        tq = tq_max                          # multiple of 16 (bf16 sublane pack)
    if B == 1 and T1 > 32:
        # Guarantee >=2 parallel grid steps so dual-TensorCore chips (v7x) are fed.
        tq = min(tq, _round_up((T1 + 1) // 2, 16))
    T1p = _round_up(T1, tq)

    q_enc, k_enc = _proj_call(params, q, k, T1p, n_att)
    attn, attn_logprob = _attn_call(q_enc, k_enc, temperature, tq, T1,
                                    attn_dtype, logprob_dtype)
    return attn, attn_logprob


# ----------------------------------------------------------------------------
# Parameter init (PyTorch layout) + TPU-layout prep (im2col + 128-lane padding)
# ----------------------------------------------------------------------------
def init_params(key, n_mel, n_text, n_att):
    """Raw params in PyTorch layout: conv weight (Cout, Cin, K), bias (Cout,)."""
    ks = jax.random.split(key, 10)
    relu_gain = math.sqrt(2.0)

    def xavier(k, cout, cin, ksize, gain):
        bound = gain * math.sqrt(6.0 / (cin * ksize + cout * ksize))
        return jax.random.uniform(k, (cout, cin, ksize), jnp.float32, -bound, bound)

    def conv_bias(k, cout, cin, ksize):
        bound = 1.0 / math.sqrt(cin * ksize)
        return jax.random.uniform(k, (cout,), jnp.float32, -bound, bound)

    return {
        "key_w1": xavier(ks[0], 2 * n_text, n_text, 3, relu_gain),
        "key_b1": conv_bias(ks[1], 2 * n_text, n_text, 3),
        "key_w2": xavier(ks[2], n_att, 2 * n_text, 1, 1.0),
        "key_b2": conv_bias(ks[3], n_att, 2 * n_text, 1),
        "query_w1": xavier(ks[4], 2 * n_mel, n_mel, 3, relu_gain),
        "query_b1": conv_bias(ks[5], 2 * n_mel, n_mel, 3),
        "query_w2": xavier(ks[6], n_mel, 2 * n_mel, 1, 1.0),
        "query_b2": conv_bias(ks[7], n_mel, 2 * n_mel, 1),
        "query_w3": xavier(ks[8], n_att, n_mel, 1, 1.0),
        "query_b3": conv_bias(ks[9], n_att, n_mel, 1),
    }


def prep_params(raw, n_mel, n_text, n_att, compute_dtype=jnp.bfloat16):
    """PyTorch (Cout,Cin,K) weights -> im2col (K*Cin_pad, Cout_pad) bf16, padded f32 biases."""
    Cmp = _round_up(n_mel, 128)
    Ctp = _round_up(n_text, 128)
    C2m = _round_up(2 * n_mel, 128)
    C2t = _round_up(2 * n_text, 128)
    Cm = _round_up(n_mel, 128)
    Ca = _round_up(n_att + 2, 128)   # >=2 spare lanes hold the stashed norm terms

    def w_im2col(w, cout_p, cin_p):
        Cout, Cin, K = w.shape
        w = jnp.transpose(w, (2, 1, 0))                       # (K, Cin, Cout)
        if cin_p > Cin:
            w = jnp.pad(w, ((0, 0), (0, cin_p - Cin), (0, 0)))
        w = w.reshape(-1, Cout)                               # (K*Cin_p, Cout)
        if cout_p > Cout:
            w = jnp.pad(w, ((0, 0), (0, cout_p - Cout)))
        return w.astype(compute_dtype)

    def bias(b, cout_p):
        return jnp.pad(b, (0, cout_p - b.shape[0])).reshape(1, cout_p).astype(jnp.float32)

    return {
        "qw1": w_im2col(raw["query_w1"], C2m, cin_p=Cmp),
        "qb1": bias(raw["query_b1"], C2m),
        "qw2": w_im2col(raw["query_w2"], Cm, cin_p=C2m),
        "qb2": bias(raw["query_b2"], Cm),
        "qw3": w_im2col(raw["query_w3"], Ca, cin_p=Cm),
        "qb3": bias(raw["query_b3"], Ca),
        "kw1": w_im2col(raw["key_w1"], C2t, cin_p=Ctp),
        "kb1": bias(raw["key_b1"], C2t),
        "kw2": w_im2col(raw["key_w2"], Ca, cin_p=C2t),
        "kb2": bias(raw["key_b2"], Ca),
    }


# ----------------------------------------------------------------------------
# Pure-JAX f32 reference (exact module math) for the sanity check
# ----------------------------------------------------------------------------
def _ref_conv1d(x_bct, w_oik, b_o):
    Cout, Cin, K = w_oik.shape
    pad = (K - 1) // 2
    T = x_bct.shape[-1]
    xp = jnp.pad(x_bct, ((0, 0), (0, 0), (pad, pad)))
    out = sum(jnp.einsum("bct,oc->bot", xp[:, :, k:k + T], w_oik[:, :, k])
              for k in range(K))
    return out + b_o[None, :, None]


def _ref_forward(raw, queries, keys, temperature):
    k = jnp.maximum(_ref_conv1d(keys, raw["key_w1"], raw["key_b1"]), 0.0)
    k_enc = _ref_conv1d(k, raw["key_w2"], raw["key_b2"])
    q = jnp.maximum(_ref_conv1d(queries, raw["query_w1"], raw["query_b1"]), 0.0)
    q = jnp.maximum(_ref_conv1d(q, raw["query_w2"], raw["query_b2"]), 0.0)
    q_enc = _ref_conv1d(q, raw["query_w3"], raw["query_b3"])
    diff = q_enc[:, :, :, None] - k_enc[:, :, None, :]           # (B, C, T1, T2)
    attn_log = -temperature * jnp.sum(diff * diff, axis=1, keepdims=True)
    attn = jax.nn.softmax(attn_log, axis=3)
    return attn, attn_log


# ----------------------------------------------------------------------------
if __name__ == "__main__":
    # Small shapes consistent with the module: queries B x C_mel x T1, keys B x C_text x T2.
    B, n_mel, n_text, n_att = 2, 16, 32, 16
    T1, T2 = 16, 8
    temperature = 0.0005

    key = jax.random.PRNGKey(0)
    k_params, k_q, k_k = jax.random.split(key, 3)
    raw = init_params(k_params, n_mel, n_text, n_att)
    prepped = prep_params(raw, n_mel, n_text, n_att)
    queries = jax.random.normal(k_q, (B, n_mel, T1), jnp.float32)
    keys = jax.random.normal(k_k, (B, n_text, T2), jnp.float32)

    fwd = jax.jit(alignment_encoder_forward,
                  static_argnames=("n_att", "temperature", "tq_max",
                                   "attn_dtype", "logprob_dtype"))
    attn, attn_logprob = fwd(prepped, queries, keys, n_att=n_att,
                             temperature=temperature)
    jax.block_until_ready((attn, attn_logprob))

    # sanity check against the exact f32 module math (kernels use bf16 MXU operands,
    # attn is returned in bf16, attn_logprob in f32)
    attn_ref, logp_ref = _ref_forward(raw, queries, keys, temperature)
    assert attn.shape == (B, 1, T1, T2) and attn_logprob.shape == (B, 1, T1, T2)
    attn_f32 = attn.astype(jnp.float32)
    err_a = float(jnp.max(jnp.abs(attn_f32 - attn_ref)))
    err_l = float(jnp.max(jnp.abs(attn_logprob - logp_ref)))
    assert jnp.allclose(attn_f32, attn_ref, atol=5e-3, rtol=0.0), err_a
    assert jnp.allclose(attn_logprob, logp_ref, atol=2e-3, rtol=0.0), err_l

    print("KERNEL_OK")
</pallas_src>

<mosaic_0001>
module attributes {stable_mosaic.version = 11 : i64} {
  func.func @_proj_kernel(%arg0: i32, %arg1: memref<1x16x128xbf16, #tpu.memory_space<vmem>>, %arg2: memref<1x8x128xbf16, #tpu.memory_space<vmem>>, %arg3: memref<384x128xbf16, #tpu.memory_space<vmem>>, %arg4: memref<1x128xf32, #tpu.memory_space<vmem>>, %arg5: memref<128x128xbf16, #tpu.memory_space<vmem>>, %arg6: memref<1x128xf32, #tpu.memory_space<vmem>>, %arg7: memref<128x128xbf16, #tpu.memory_space<vmem>>, %arg8: memref<1x128xf32, #tpu.memory_space<vmem>>, %arg9: memref<384x128xbf16, #tpu.memory_space<vmem>>, %arg10: memref<1x128xf32, #tpu.memory_space<vmem>>, %arg11: memref<128x128xbf16, #tpu.memory_space<vmem>>, %arg12: memref<1x128xf32, #tpu.memory_space<vmem>>, %arg13: memref<1x16x128xbf16, #tpu.memory_space<vmem>>, %arg14: memref<1x8x128xbf16, #tpu.memory_space<vmem>>) attributes {dimension_semantics = [#tpu.dimension_semantics<parallel>], iteration_bounds = array<i64: 2>, scalar_prefetch = 0 : i64, scratch_operands = 0 : i64, tpu.core_type = #tpu.core_type<tc>, window_params = [{transform_indices = @transform_0, window_bounds = array<i64: 1, 16, 128>}, {transform_indices = @transform_1, window_bounds = array<i64: 1, 8, 128>}, {pipeline_mode = #tpu.pipeline_mode<synchronous>, transform_indices = @transform_2, window_bounds = array<i64: 384, 128>}, {pipeline_mode = #tpu.pipeline_mode<synchronous>, transform_indices = @transform_3, window_bounds = array<i64: 1, 128>}, {pipeline_mode = #tpu.pipeline_mode<synchronous>, transform_indices = @transform_4, window_bounds = array<i64: 128, 128>}, {pipeline_mode = #tpu.pipeline_mode<synchronous>, transform_indices = @transform_5, window_bounds = array<i64: 1, 128>}, {pipeline_mode = #tpu.pipeline_mode<synchronous>, transform_indices = @transform_6, window_bounds = array<i64: 128, 128>}, {pipeline_mode = #tpu.pipeline_mode<synchronous>, transform_indices = @transform_7, window_bounds = array<i64: 1, 128>}, {pipeline_mode = #tpu.pipeline_mode<synchronous>, transform_indices = @transform_8, window_bounds = array<i64: 384, 128>}, {pipeline_mode = #tpu.pipeline_mode<synchronous>, transform_indices = @transform_9, window_bounds = array<i64: 1, 128>}, {pipeline_mode = #tpu.pipeline_mode<synchronous>, transform_indices = @transform_10, window_bounds = array<i64: 128, 128>}, {pipeline_mode = #tpu.pipeline_mode<synchronous>, transform_indices = @transform_11, window_bounds = array<i64: 1, 128>}, {transform_indices = @transform_12, window_bounds = array<i64: 1, 16, 128>}, {transform_indices = @transform_13, window_bounds = array<i64: 1, 8, 128>}]} {
    %c0 = arith.constant 0 : index
    %c0_0 = arith.constant 0 : index
    %c0_1 = arith.constant 0 : index
    %0 = vector.load %arg2[%c0, %c0_0, %c0_1] : memref<1x8x128xbf16, #tpu.memory_space<vmem>>, vector<1x8x128xbf16>
    %1 = vector.shape_cast %0 : vector<1x8x128xbf16> to vector<8x128xbf16>
    %cst = arith.constant 0.000000e+00 : bf16
    %2 = vector.broadcast %cst : bf16 to vector<1x128xbf16>
    %3 = vector.extract_strided_slice %1 {offsets = [0, 0], sizes = [7, 128], strides = [1, 1]} : vector<8x128xbf16> to vector<7x128xbf16>
    %4 = tpu.concatenate %2, %3 in 0 : vector<1x128xbf16>, vector<7x128xbf16> -> vector<8x128xbf16>
    %5 = vector.extract_strided_slice %1 {offsets = [1, 0], sizes = [7, 128], strides = [1, 1]} : vector<8x128xbf16> to vector<7x128xbf16>
    %6 = tpu.concatenate %5, %2 in 0 : vector<7x128xbf16>, vector<1x128xbf16> -> vector<8x128xbf16>
    %7 = tpu.concatenate %4, %1, %6 in 1 : vector<8x128xbf16>, vector<8x128xbf16>, vector<8x128xbf16> -> vector<8x384xbf16>
    %c0_2 = arith.constant 0 : index
    %c0_3 = arith.constant 0 : index
    %8 = vector.load %arg9[%c0_2, %c0_3] : memref<384x128xbf16, #tpu.memory_space<vmem>>, vector<384x128xbf16>
    %cst_4 = arith.constant dense<0.000000e+00> : vector<8x128xf32>
    %9 = tpu.matmul %7, %8, %cst_4 {dimension_numbers = #tpu.dot_dimension_numbers<[1], [0], [0], [1], [0, 0, 1, 1], [], []>} : vector<8x384xbf16>, vector<384x128xbf16>, vector<8x128xf32> -> vector<8x128xf32>
    %c0_5 = arith.constant 0 : index
    %c0_6 = arith.constant 0 : index
    %10 = vector.load %arg10[%c0_5, %c0_6] : memref<1x128xf32, #tpu.memory_space<vmem>>, vector<1x128xf32>
    %11 = vector.broadcast %10 : vector<1x128xf32> to vector<8x128xf32>
    %12 = arith.addf %9, %11 : vector<8x128xf32>
    %cst_7 = arith.constant 0.000000e+00 : f32
    %13 = vector.broadcast %cst_7 : f32 to vector<8x128xf32>
    %14 = arith.maximumf %12, %13 : vector<8x128xf32>
    %15 = arith.truncf %14 : vector<8x128xf32> to vector<8x128xbf16>
    %c0_8 = arith.constant 0 : index
    %c0_9 = arith.constant 0 : index
    %16 = vector.load %arg11[%c0_8, %c0_9] : memref<128x128xbf16, #tpu.memory_space<vmem>>, vector<128x128xbf16>
    %cst_10 = arith.constant dense<0.000000e+00> : vector<8x128xf32>
    %17 = tpu.matmul %15, %16, %cst_10 {dimension_numbers = #tpu.dot_dimension_numbers<[1], [0], [0], [1], [0, 0, 1, 1], [], []>} : vector<8x128xbf16>, vector<128x128xbf16>, vector<8x128xf32> -> vector<8x128xf32>
    %c0_11 = arith.constant 0 : index
    %c0_12 = arith.constant 0 : index
    %18 = vector.load %arg12[%c0_11, %c0_12] : memref<1x128xf32, #tpu.memory_space<vmem>>, vector<1x128xf32>
    %19 = vector.broadcast %18 : vector<1x128xf32> to vector<8x128xf32>
    %20 = arith.addf %17, %19 : vector<8x128xf32>
    %21 = arith.truncf %20 : vector<8x128xf32> to vector<8x128xbf16>
    %22 = arith.extf %21 : vector<8x128xbf16> to vector<8x128xf32>
    %23 = arith.mulf %22, %22 : vector<8x128xf32>
    %cst_13 = arith.constant dense<0.000000e+00> : vector<8xf32>
    %24 = vector.multi_reduction <add>, %23, %cst_13 [1] : vector<8x128xf32> to vector<8xf32>
    %25 = vector.shape_cast %24 : vector<8xf32> to vector<8x1xf32>
    %26 = tpu.iota {dimensions = array<i32: 1>} : vector<8x128xi32>
    %c16_i32 = arith.constant 16 : i32
    %27 = vector.broadcast %c16_i32 : i32 to vector<8x128xi32>
    %28 = arith.cmpi eq, %26, %27 : vector<8x128xi32>
    %cst_14 = arith.constant 1.000000e+00 : f32
    %29 = vector.broadcast %cst_14 : f32 to vector<8x128xf32>
    %30 = arith.select %28, %29, %22 : vector<8x128xi1>, vector<8x128xf32>
    %c17_i32 = arith.constant 17 : i32
    %31 = vector.broadcast %c17_i32 : i32 to vector<8x128xi32>
    %32 = arith.cmpi eq, %26, %31 : vector<8x128xi32>
    %33 = vector.shape_cast %25 : vector<8x1xf32> to vector<8x1xf32>
    %34 = vector.broadcast %33 : vector<8x1xf32> to vector<8x128xf32>
    %35 = arith.select %32, %34, %30 : vector<8x128xi1>, vector<8x128xf32>
    %36 = arith.truncf %35 : vector<8x128xf32> to vector<8x128xbf16>
    %c0_15 = arith.constant 0 : index
    %c0_16 = arith.constant 0 : index
    %c0_17 = arith.constant 0 : index
    %37 = vector.load %arg14[%c0_15, %c0_16, %c0_17] : memref<1x8x128xbf16, #tpu.memory_space<vmem>>, vector<1x8x128xbf16>
    %38 = vector.shape_cast %37 : vector<1x8x128xbf16> to vector<8x128xbf16>
    %39 = vector.shape_cast %36 : vector<8x128xbf16> to vector<1x8x128xbf16>
    tpu.vector_store %arg14[%c0_15, %c0_16, %c0_17], %39 {strides = array<i32>} : memref<1x8x128xbf16, #tpu.memory_space<vmem>>, vector<1x8x128xbf16>,
    %c0_18 = arith.constant 0 : index
    %c0_19 = arith.constant 0 : index
    %c0_20 = arith.constant 0 : index
    %40 = vector.load %arg1[%c0_18, %c0_19, %c0_20] : memref<1x16x128xbf16, #tpu.memory_space<vmem>>, vector<1x16x128xbf16>
    %41 = vector.shape_cast %40 : vector<1x16x128xbf16> to vector<16x128xbf16>
    %cst_21 = arith.constant 0.000000e+00 : bf16
    %42 = vector.broadcast %cst_21 : bf16 to vector<1x128xbf16>
    %43 = vector.extract_strided_slice %41 {offsets = [0, 0], sizes = [15, 128], strides = [1, 1]} : vector<16x128xbf16> to vector<15x128xbf16>
    %44 = tpu.concatenate %42, %43 in 0 : vector<1x128xbf16>, vector<15x128xbf16> -> vector<16x128xbf16>
    %45 = vector.extract_strided_slice %41 {offsets = [1, 0], sizes = [15, 128], strides = [1, 1]} : vector<16x128xbf16> to vector<15x128xbf16>
    %46 = tpu.concatenate %45, %42 in 0 : vector<15x128xbf16>, vector<1x128xbf16> -> vector<16x128xbf16>
    %47 = tpu.concatenate %44, %41, %46 in 1 : vector<16x128xbf16>, vector<16x128xbf16>, vector<16x128xbf16> -> vector<16x384xbf16>
    %c0_22 = arith.constant 0 : index
    %c0_23 = arith.constant 0 : index
    %48 = vector.load %arg3[%c0_22, %c0_23] : memref<384x128xbf16, #tpu.memory_space<vmem>>, vector<384x128xbf16>
    %cst_24 = arith.constant dense<0.000000e+00> : vector<16x128xf32>
    %49 = tpu.matmul %47, %48, %cst_24 {dimension_numbers = #tpu.dot_dimension_numbers<[1], [0], [0], [1], [0, 0, 1, 1], [], []>} : vector<16x384xbf16>, vector<384x128xbf16>, vector<16x128xf32> -> vector<16x128xf32>
    %c0_25 = arith.constant 0 : index
    %c0_26 = arith.constant 0 : index
    %50 = vector.load %arg4[%c0_25, %c0_26] : memref<1x128xf32, #tpu.memory_space<vmem>>, vector<1x128xf32>
    %51 = vector.broadcast %50 : vector<1x128xf32> to vector<16x128xf32>
    %52 = arith.addf %49, %51 : vector<16x128xf32>
    %cst_27 = arith.constant 0.000000e+00 : f32
    %53 = vector.broadcast %cst_27 : f32 to vector<16x128xf32>
    %54 = arith.maximumf %52, %53 : vector<16x128xf32>
    %55 = arith.truncf %54 : vector<16x128xf32> to vector<16x128xbf16>
    %c0_28 = arith.constant 0 : index
    %c0_29 = arith.constant 0 : index
    %56 = vector.load %arg5[%c0_28, %c0_29] : memref<128x128xbf16, #tpu.memory_space<vmem>>, vector<128x128xbf16>
    %cst_30 = arith.constant dense<0.000000e+00> : vector<16x128xf32>
    %57 = tpu.matmul %55, %56, %cst_30 {dimension_numbers = #tpu.dot_dimension_numbers<[1], [0], [0], [1], [0, 0, 1, 1], [], []>} : vector<16x128xbf16>, vector<128x128xbf16>, vector<16x128xf32> -> vector<16x128xf32>
    %c0_31 = arith.constant 0 : index
    %c0_32 = arith.constant 0 : index
    %58 = vector.load %arg6[%c0_31, %c0_32] : memref<1x128xf32, #tpu.memory_space<vmem>>, vector<1x128xf32>
    %59 = vector.broadcast %58 : vector<1x128xf32> to vector<16x128xf32>
    %60 = arith.addf %57, %59 : vector<16x128xf32>
    %cst_33 = arith.constant 0.000000e+00 : f32
    %61 = vector.broadcast %cst_33 : f32 to vector<16x128xf32>
    %62 = arith.maximumf %60, %61 : vector<16x128xf32>
    %63 = arith.truncf %62 : vector<16x128xf32> to vector<16x128xbf16>
    %c0_34 = arith.constant 0 : index
    %c0_35 = arith.constant 0 : index
    %64 = vector.load %arg7[%c0_34, %c0_35] : memref<128x128xbf16, #tpu.memory_space<vmem>>, vector<128x128xbf16>
    %cst_36 = arith.constant dense<0.000000e+00> : vector<16x128xf32>
    %65 = tpu.matmul %63, %64, %cst_36 {dimension_numbers = #tpu.dot_dimension_numbers<[1], [0], [0], [1], [0, 0, 1, 1], [], []>} : vector<16x128xbf16>, vector<128x128xbf16>, vector<16x128xf32> -> vector<16x128xf32>
    %c0_37 = arith.constant 0 : index
    %c0_38 = arith.constant 0 : index
    %66 = vector.load %arg8[%c0_37, %c0_38] : memref<1x128xf32, #tpu.memory_space<vmem>>, vector<1x128xf32>
    %67 = vector.broadcast %66 : vector<1x128xf32> to vector<16x128xf32>
    %68 = arith.addf %65, %67 : vector<16x128xf32>
    %69 = arith.truncf %68 : vector<16x128xf32> to vector<16x128xbf16>
    %70 = arith.extf %69 : vector<16x128xbf16> to vector<16x128xf32>
    %71 = arith.mulf %70, %70 : vector<16x128xf32>
    %cst_39 = arith.constant dense<0.000000e+00> : vector<16xf32>
    %72 = vector.multi_reduction <add>, %71, %cst_39 [1] : vector<16x128xf32> to vector<16xf32>
    %73 = vector.shape_cast %72 : vector<16xf32> to vector<16x1xf32>
    %74 = tpu.iota {dimensions = array<i32: 1>} : vector<16x128xi32>
    %c16_i32_40 = arith.constant 16 : i32
    %75 = vector.broadcast %c16_i32_40 : i32 to vector<16x128xi32>
    %76 = arith.cmpi eq, %74, %75 : vector<16x128xi32>
    %cst_41 = arith.constant -5.000000e-01 : f32
    %77 = vector.broadcast %cst_41 : f32 to vector<16x1xf32>
    %78 = arith.mulf %77, %73 : vector<16x1xf32>
    %79 = vector.shape_cast %78 : vector<16x1xf32> to vector<16x1xf32>
    %80 = vector.broadcast %79 : vector<16x1xf32> to vector<16x128xf32>
    %81 = arith.select %76, %80, %70 : vector<16x128xi1>, vector<16x128xf32>
    %c17_i32_42 = arith.constant 17 : i32
    %82 = vector.broadcast %c17_i32_42 : i32 to vector<16x128xi32>
    %83 = arith.cmpi eq, %74, %82 : vector<16x128xi32>
    %cst_43 = arith.constant -5.000000e-01 : f32
    %84 = vector.broadcast %cst_43 : f32 to vector<16x128xf32>
    %85 = arith.select %83, %84, %81 : vector<16x128xi1>, vector<16x128xf32>
    %86 = arith.truncf %85 : vector<16x128xf32> to vector<16x128xbf16>
    %c0_44 = arith.constant 0 : index
    %c0_45 = arith.constant 0 : index
    %c0_46 = arith.constant 0 : index
    %87 = vector.load %arg13[%c0_44, %c0_45, %c0_46] : memref<1x16x128xbf16, #tpu.memory_space<vmem>>, vector<1x16x128xbf16>
    %88 = vector.shape_cast %87 : vector<1x16x128xbf16> to vector<16x128xbf16>
    %89 = vector.shape_cast %86 : vector<16x128xbf16> to vector<1x16x128xbf16>
    tpu.vector_store %arg13[%c0_44, %c0_45, %c0_46], %89 {strides = array<i32>} : memref<1x16x128xbf16, #tpu.memory_space<vmem>>, vector<1x16x128xbf16>,
    return
  }
  func.func @transform_0(%arg0: i32) -> (i32, i32, i32) {
    %c0_i32 = arith.constant 0 : i32
    %c0_i32_0 = arith.constant 0 : i32
    %c0_i32_1 = arith.constant 0 : i32
    return %arg0, %c0_i32, %c0_i32_0 : i32, i32, i32
  }
  func.func @transform_1(%arg0: i32) -> (i32, i32, i32) {
    %c0_i32 = arith.constant 0 : i32
    %c0_i32_0 = arith.constant 0 : i32
    %c0_i32_1 = arith.constant 0 : i32
    return %arg0, %c0_i32, %c0_i32_0 : i32, i32, i32
  }
  func.func @transform_2(%arg0: i32) -> (i32, i32) {
    %c0_i32 = arith.constant 0 : i32
    %c0_i32_0 = arith.constant 0 : i32
    %c0_i32_1 = arith.constant 0 : i32
    return %c0_i32, %c0_i32_0 : i32, i32
  }
  func.func @transform_3(%arg0: i32) -> (i32, i32) {
    %c0_i32 = arith.constant 0 : i32
    %c0_i32_0 = arith.constant 0 : i32
    %c0_i32_1 = arith.constant 0 : i32
    return %c0_i32, %c0_i32_0 : i32, i32
  }
  func.func @transform_4(%arg0: i32) -> (i32, i32) {
    %c0_i32 = arith.constant 0 : i32
    %c0_i32_0 = arith.constant 0 : i32
    %c0_i32_1 = arith.constant 0 : i32
    return %c0_i32, %c0_i32_0 : i32, i32
  }
  func.func @transform_5(%arg0: i32) -> (i32, i32) {
    %c0_i32 = arith.constant 0 : i32
    %c0_i32_0 = arith.constant 0 : i32
    %c0_i32_1 = arith.constant 0 : i32
    return %c0_i32, %c0_i32_0 : i32, i32
  }
  func.func @transform_6(%arg0: i32) -> (i32, i32) {
    %c0_i32 = arith.constant 0 : i32
    %c0_i32_0 = arith.constant 0 : i32
    %c0_i32_1 = arith.constant 0 : i32
    return %c0_i32, %c0_i32_0 : i32, i32
  }
  func.func @transform_7(%arg0: i32) -> (i32, i32) {
    %c0_i32 = arith.constant 0 : i32
    %c0_i32_0 = arith.constant 0 : i32
    %c0_i32_1 = arith.constant 0 : i32
    return %c0_i32, %c0_i32_0 : i32, i32
  }
  func.func @transform_8(%arg0: i32) -> (i32, i32) {
    %c0_i32 = arith.constant 0 : i32
    %c0_i32_0 = arith.constant 0 : i32
    %c0_i32_1 = arith.constant 0 : i32
    return %c0_i32, %c0_i32_0 : i32, i32
  }
  func.func @transform_9(%arg0: i32) -> (i32, i32) {
    %c0_i32 = arith.constant 0 : i32
    %c0_i32_0 = arith.constant 0 : i32
    %c0_i32_1 = arith.constant 0 : i32
    return %c0_i32, %c0_i32_0 : i32, i32
  }
  func.func @transform_10(%arg0: i32) -> (i32, i32) {
    %c0_i32 = arith.constant 0 : i32
    %c0_i32_0 = arith.constant 0 : i32
    %c0_i32_1 = arith.constant 0 : i32
    return %c0_i32, %c0_i32_0 : i32, i32
  }
  func.func @transform_11(%arg0: i32) -> (i32, i32) {
    %c0_i32 = arith.constant 0 : i32
    %c0_i32_0 = arith.constant 0 : i32
    %c0_i32_1 = arith.constant 0 : i32
    return %c0_i32, %c0_i32_0 : i32, i32
  }
  func.func @transform_12(%arg0: i32) -> (i32, i32, i32) {
    %c0_i32 = arith.constant 0 : i32
    %c0_i32_0 = arith.constant 0 : i32
    %c0_i32_1 = arith.constant 0 : i32
    return %arg0, %c0_i32, %c0_i32_0 : i32, i32, i32
  }
  func.func @transform_13(%arg0: i32) -> (i32, i32, i32) {
    %c0_i32 = arith.constant 0 : i32
    %c0_i32_0 = arith.constant 0 : i32
    %c0_i32_1 = arith.constant 0 : i32
    return %arg0, %c0_i32, %c0_i32_0 : i32, i32, i32
  }
}

module attributes {stable_mosaic.version = 11 : i64} {
  func.func @_attn_kernel(%arg0: i32, %arg1: i32, %arg2: memref<1x16x128xbf16, #tpu.memory_space<vmem>>, %arg3: memref<1x8x128xbf16, #tpu.memory_space<vmem>>, %arg4: memref<1x1x16x8xbf16, #tpu.memory_space<vmem>>, %arg5: memref<1x1x16x8xf32, #tpu.memory_space<vmem>>) attributes {dimension_semantics = [#tpu.dimension_semantics<parallel>, #tpu.dimension_semantics<parallel>], iteration_bounds = array<i64: 2, 1>, scalar_prefetch = 0 : i64, scratch_operands = 0 : i64, tpu.core_type = #tpu.core_type<tc>, window_params = [{transform_indices = @transform_0, window_bounds = array<i64: 1, 16, 128>}, {transform_indices = @transform_1, window_bounds = array<i64: 1, 8, 128>}, {transform_indices = @transform_2, window_bounds = array<i64: 1, 1, 16, 8>}, {transform_indices = @transform_3, window_bounds = array<i64: 1, 1, 16, 8>}]} {
    %c0 = arith.constant 0 : index
    %c0_0 = arith.constant 0 : index
    %c0_1 = arith.constant 0 : index
    %0 = vector.load %arg2[%c0, %c0_0, %c0_1] : memref<1x16x128xbf16, #tpu.memory_space<vmem>>, vector<1x16x128xbf16>
    %1 = vector.shape_cast %0 : vector<1x16x128xbf16> to vector<16x128xbf16>
    %c0_2 = arith.constant 0 : index
    %c0_3 = arith.constant 0 : index
    %c0_4 = arith.constant 0 : index
    %2 = vector.load %arg3[%c0_2, %c0_3, %c0_4] : memref<1x8x128xbf16, #tpu.memory_space<vmem>>, vector<1x8x128xbf16>
    %3 = vector.shape_cast %2 : vector<1x8x128xbf16> to vector<8x128xbf16>
    %4 = arith.extf %1 : vector<16x128xbf16> to vector<16x128xf32>
    %cst = arith.constant 1.000000e-03 : f32
    %5 = vector.broadcast %cst : f32 to vector<16x128xf32>
    %6 = arith.mulf %4, %5 : vector<16x128xf32>
    %7 = arith.truncf %6 : vector<16x128xf32> to vector<16x128xbf16>
    %cst_5 = arith.constant dense<0.000000e+00> : vector<16x8xf32>
    %8 = tpu.matmul %7, %3, %cst_5 {dimension_numbers = #tpu.dot_dimension_numbers<[1], [1], [0], [0], [0, 0, 1, 0], [], []>} : vector<16x128xbf16>, vector<8x128xbf16>, vector<16x8xf32> -> vector<16x8xf32>
    %c0_6 = arith.constant 0 : index
    %c0_7 = arith.constant 0 : index
    %c0_8 = arith.constant 0 : index
    %c0_9 = arith.constant 0 : index
    %9 = vector.load %arg5[%c0_6, %c0_7, %c0_8, %c0_9] : memref<1x1x16x8xf32, #tpu.memory_space<vmem>>, vector<1x1x16x8xf32>
    %10 = vector.shape_cast %9 : vector<1x1x16x8xf32> to vector<16x8xf32>
    %11 = vector.shape_cast %8 : vector<16x8xf32> to vector<1x1x16x8xf32>
    tpu.vector_store %arg5[%c0_6, %c0_7, %c0_8, %c0_9], %11 {strides = array<i32>} : memref<1x1x16x8xf32, #tpu.memory_space<vmem>>, vector<1x1x16x8xf32>,
    %cst_10 = arith.constant dense<0xFF800000> : vector<16xf32>
    %12 = vector.multi_reduction <maximumf>, %8, %cst_10 [1] : vector<16x8xf32> to vector<16xf32>
    %13 = vector.shape_cast %12 : vector<16xf32> to vector<16x1xf32>
    %14 = vector.broadcast %13 : vector<16x1xf32> to vector<16x8xf32>
    %15 = arith.subf %8, %14 : vector<16x8xf32>
    %16 = math.exp %15 : vector<16x8xf32>
    %cst_11 = arith.constant dense<0.000000e+00> : vector<16xf32>
    %17 = vector.multi_reduction <add>, %16, %cst_11 [1] : vector<16x8xf32> to vector<16xf32>
    %18 = vector.shape_cast %17 : vector<16xf32> to vector<16x1xf32>
    %19 = tpu.reciprocal %18 {approx = true} : vector<16x1xf32> -> vector<16x1xf32>
    %20 = vector.broadcast %19 : vector<16x1xf32> to vector<16x8xf32>
    %21 = arith.mulf %16, %20 : vector<16x8xf32>
    %22 = arith.truncf %21 : vector<16x8xf32> to vector<16x8xbf16>
    %c0_12 = arith.constant 0 : index
    %c0_13 = arith.constant 0 : index
    %c0_14 = arith.constant 0 : index
    %c0_15 = arith.constant 0 : index
    %23 = vector.load %arg4[%c0_12, %c0_13, %c0_14, %c0_15] : memref<1x1x16x8xbf16, #tpu.memory_space<vmem>>, vector<1x1x16x8xbf16>
    %24 = vector.shape_cast %23 : vector<1x1x16x8xbf16> to vector<16x8xbf16>
    %25 = vector.shape_cast %22 : vector<16x8xbf16> to vector<1x1x16x8xbf16>
    tpu.vector_store %arg4[%c0_12, %c0_13, %c0_14, %c0_15], %25 {strides = array<i32>} : memref<1x1x16x8xbf16, #tpu.memory_space<vmem>>, vector<1x1x16x8xbf16>,
    return
  }
  func.func @transform_0(%arg0: i32, %arg1: i32) -> (i32, i32, i32) {
    %c0_i32 = arith.constant 0 : i32
    %c0_i32_0 = arith.constant 0 : i32
    return %arg0, %arg1, %c0_i32 : i32, i32, i32
  }
  func.func @transform_1(%arg0: i32, %arg1: i32) -> (i32, i32, i32) {
    %c0_i32 = arith.constant 0 : i32
    %c0_i32_0 = arith.constant 0 : i32
    %c0_i32_1 = arith.constant 0 : i32
    return %arg0, %c0_i32, %c0_i32_0 : i32, i32, i32
  }
  func.func @transform_2(%arg0: i32, %arg1: i32) -> (i32, i32, i32, i32) {
    %c0_i32 = arith.constant 0 : i32
    %c0_i32_0 = arith.constant 0 : i32
    %c0_i32_1 = arith.constant 0 : i32
    return %arg0, %c0_i32, %arg1, %c0_i32_0 : i32, i32, i32, i32
  }
  func.func @transform_3(%arg0: i32, %arg1: i32) -> (i32, i32, i32, i32) {
    %c0_i32 = arith.constant 0 : i32
    %c0_i32_0 = arith.constant 0 : i32
    %c0_i32_1 = arith.constant 0 : i32
    return %arg0, %c0_i32, %arg1, %c0_i32_0 : i32, i32, i32, i32
  }
}

</mosaic_0001>

<bundles_post_ra>
// kernel: alignment_encoder_forward.3
= control target key start
LH: loop header
LB: loop body
LE: loop exit
PB: predicated region body
PF: predicated region fallthrough
CT: control target
= control target key end

     0   :  { %s599_s12 = smov 0   ;;  %s601_s13 = smov 0   ;;  %s653_s0 = inlined_call_operand.vmem [shape: bf16[2,16,128], index: 0, kind: input, shape index: {}]   ;;  %s654_s1 = inlined_call_operand.vmem [shape: bf16[2,8,128], index: 1, kind: input, shape index: {}]   ;;  %s655_s2 = inlined_call_operand.vmem [shape: bf16[2,1,16,8], index: 2, kind: output, shape index: {0}]   ;;  %s656_s3 = inlined_call_operand.vmem [shape: f32[2,1,16,8], index: 3, kind: output, shape index: {1}]  }
   0x1   :  { %s603_s14 = smov 0  }
   0x2 LB: > { %s26_s15 = sadd.s32 1, %s571_s13  ;;  %p490_p0 = scmp.ge.s32.totalorder %s575_s14, 1  ;;  %s575_s14 = sphi %s603_s14, %s14_s14   ;;  %s571_s13 = sphi %s601_s13, %s658_s13   ;;  %s567_s12 = sphi %s599_s12, %s657_s12  }
   0x3   : > { %p28_p1 = scmp.ge.s32.totalorder %s26_s15, 2  ;;  %p172_p2 = scmp.lt.s32.totalorder %s575_s14, 3 }
   0x5   : > { %s660_s15 = smov (%p28_p1, %s26_s15), 0  ;;  %p173_p3 = pnand %p490_p0, %p172_p2 }
   0x6   : > { %p218_p4 = scmp.lt.s32.totalorder (!%p173_p3), %s567_s12, 1 }
   0x7   : > { %176 = sbr.rel (%p173_p3) target bundleno = 535 (0x217), region = 28 }
   0xc   : > { %v577_v0 = vmov 0.0   ;;  %vm578_vm0 = vmmov 0   ;;  %s662_s12 = smov (!%p218_p4, %s567_s12), 1  ;;  %vm301_vm1 = vcmask 64512   ;;  %vm334_vm2 = vcmask 60416  }
   0xd   : > { %513 = vmatprep.subr.bf16.mxu0 %v577_v0  ;;  %515 = vmatprep.mubr.msk.bf16.mxu0 %vm578_vm0, %v577_v0  ;;  %s493_s16 = sshll.u32 %s662_s12, 2  ;;  %s502_s17 = sshll.u32 %s662_s12, 3 }
   0xe   : > { %s230_s20 = scalar_lea.vmem %s654_s1, %s493_s16  ;;  %s225_s23 = scalar_lea.vmem %s653_s0, %s502_s17 }
   0xf   : > { %v254_v1 = vld [vmem:[%s230_s20] sm:$0xf]  ;;  %s504_s24 = sshll.u32 %s662_s12, 4  ;;  %s239_s30 = scalar_lea.vmem %s655_s2, %s502_s17 }
  0x10   : > { %v508_v2 = vld [vmem:[%s225_s23] sm:$0xff]   ;;  %514 = vmatpush3.bf16.xpose.msra.mxu0 %v254_v1  ;;  %s249_s27 = scalar_lea.vmem %s656_s3, %s504_s24 }
  0x11   : > { %v509_v3 = vunpack.c.l.bf16 %v508_v2  ;;  %v510_v4 = vunpack.c.h.bf16 %v508_v2 }
  0x13   : > { %v257_v5 = vmul.f32 0.001, %v509_v3  ;;  %v258_v6 = vmul.f32 0.001, %v510_v4 }
  0x15   : > { %v259_v7 = vpack.c.bf16 %v258_v6, %v257_v5 }
  0x17   : > { %516 = vmatmul.mubr.bf16.vlgmr.msra.gmra.mxu0 %v259_v7 }
  0xd7   : > { %v294_v8 = vpop.f32.mrf.mxu0 }
  0xd8   : > { %302 = vst.msk [vmem:[%s249_s27] sm:$0xff] %vm301_vm1, %v294_v8  ;;  %v304_v9 = vsel %vm301_vm1, %v294_v8, -inf }
  0xd9   : > { %305 = vmax.xlane.f32.xlu0 %v304_v9  ;;  %v517_v10 = vpop.f32.mrf.mxu0 }
  0xdb   : > { %v297_v11 = vpop.f32.mrf.mxu0 }
  0xdc   : > { %303 = vst.msk [vmem:[%s249_s27 + $0x8] sm:$0xff] %vm301_vm1, %v297_v11  ;;  %v307_v12 = vsel %vm301_vm1, %v297_v11, -inf }
  0xdd   : > { %308 = vmax.xlane.f32.xlu0 %v307_v12  ;;  %v518_v13 = vpop.f32.mrf.mxu0 }
 0x162   : > { %v306_v14 = vpop.xlane.xlu0 %305 }
 0x163   : > { %v310_v15 = vsub.f32 %v294_v8, %v306_v14 }
 0x165   : > { %v312_v16 = vmul.f32 1.442695, %v310_v15 }
 0x166   : > { %v309_v17 = vpop.xlane.xlu0 %308 }
 0x167   : > { %545 = vpow2.f32 %v312_v16  ;;  %v311_v18 = vsub.f32 %v297_v11, %v309_v17 }
 0x169   : > { %v314_v19 = vmul.f32 1.442695, %v311_v18 }
 0x16b   : > { %547 = vpow2.f32 %v314_v19 }
 0x174   : > { %v546_v20 = vpop.eup %545 }
 0x175   : > { %v316_v21 = vsel %vm301_vm1, %v546_v20, 0.0 }
 0x176   : > { %317 = vadd.xlane.f32.xlu1 %v316_v21 }
 0x178   : > { %v548_v22 = vpop.eup %547 }
 0x179   : > { %v319_v23 = vsel %vm301_vm1, %v548_v22, 0.0 }
 0x17a   : > { %320 = vadd.xlane.f32.xlu1 %v319_v23 }
 0x1ff   : > { %v318_v24 = vpop.xlane.xlu1 %317 }
 0x200   : > { %549 = vrcp.f32 %v318_v24 }
 0x203   : > { %v321_v25 = vpop.xlane.xlu1 %320 }
 0x204   : > { %551 = vrcp.f32 %v321_v25 }
 0x20d   : > { %v550_v26 = vpop.eup %549 }
 0x20e   : > { %v324_v27 = vmul.f32 %v550_v26, %v546_v20 }
 0x210   : > { %v505_v28 = vpack.c.bf16 %v324_v27, %v324_v27 }
 0x211   : > { %v552_v29 = vpop.eup %551 }
 0x212   : > { %335 = vst.msk [vmem:[%s239_s30] sm:$0xf] %vm334_vm2, %v505_v28  ;;  %v325_v30 = vmul.f32 %v552_v29, %v548_v22 }
 0x214   : > { %v506_v31 = vpack.c.bf16 %v325_v30, %v325_v30 }
 0x216   : > { %336 = vst.msk [vmem:[%s239_s30 + $0x4] sm:$0xf] %vm334_vm2, %v506_v31 }
 0x217 PF: > { %s14_s14 = sadd.s32 1, %s575_s14   ;;  %s657_s12 = smov %s571_s13 }
 0x218   : > { %p11_p5 = scmp.ge.s32.totalorder %s14_s14, 4   ;;  %s658_s13 = smov %s660_s15 }
 0x21a   :  { %13 = sbr.rel (!%p11_p5) target bundleno = 2 (0x2), region = 73 }

// kernel: alignment_encoder_forward.2
= control target key start
LH: loop header
LB: loop body
LE: loop exit
PB: predicated region body
PF: predicated region fallthrough
CT: control target
= control target key end

     0   :  { %19 = vsyncpa [#allocation3], 0  ;;  %s2589_s0 = inlined_call_operand.vmem [shape: bf16[2,16,128], index: 0, kind: input, shape index: {}]   ;;  %s2590_s1 = inlined_call_operand.vmem [shape: bf16[2,8,128], index: 1, kind: input, shape index: {}]   ;;  %s2591_s2 = inlined_call_operand.hbm [shape: bf16[384,128], index: 2, kind: input, shape index: {}]   ;;  %s2592_s3 = inlined_call_operand.vmem [shape: f32[1,128], index: 3, kind: input, shape index: {}]   ;;  %s2593_s4 = inlined_call_operand.vmem [shape: bf16[128,128], index: 4, kind: input, shape index: {}]   ;;  %s2594_s5 = inlined_call_operand.vmem [shape: f32[1,128], index: 5, kind: input, shape index: {}]   ;;  %s2595_s6 = inlined_call_operand.vmem [shape: bf16[128,128], index: 6, kind: input, shape index: {}]   ;;  %s2596_s7 = inlined_call_operand.vmem [shape: f32[1,128], index: 7, kind: input, shape index: {}]   ;;  %s2597_s8 = inlined_call_operand.hbm [shape: bf16[384,128], index: 8, kind: input, shape index: {}]   ;;  %s2598_s9 = inlined_call_operand.hbm [shape: f32[1,128], index: 9, kind: input, shape index: {}]   ;;  %s2599_s10 = inlined_call_operand.hbm [shape: bf16[128,128], index: 10, kind: input, shape index: {}]   ;;  %s2600_s11 = inlined_call_operand.hbm [shape: f32[1,128], index: 11, kind: input, shape index: {}]   ;;  %s2601_s12 = inlined_call_operand.vmem [shape: bf16[2,16,128], index: 12, kind: output, shape index: {0}]   ;;  %s2602_s13 = inlined_call_operand.vmem [shape: bf16[2,8,128], index: 13, kind: output, shape index: {1}]  }
   0x1   :  { %20 = vsyncpa [#allocation5], 0 }
   0x2   :  { %21 = vsyncpa [#allocation8], 0  ;;  %s2343_s25 = smov 0  }
   0x3 LB: > { %s2349_s26 = sadd.s32 4294967295, %s2262_s25   ;;  %p1677_p0 = scmp.ge.s32.totalorder %s2262_s25, 1  ;;  %s2262_s25 = sphi %s2343_s25, %s27_s25  }
   0x4   : > { %p346_p1 = scmp.lt.s32.totalorder %s2262_s25, 3  ;;  %p2013_p2 = scmp.eq.s32.totalorder %s2349_s26, 0 }
   0x5   : > { %s2264_s28 = smov [#allocation4]   ;;  %s2265_s30 = smov [#allocation7]  }
   0x6   : > { %p2354_p3 = pnand %p1677_p0, %p346_p1  ;;  %s386_s29 = sshll.u32 %s2264_s28, 4  ;;  %s387_s29 = int_to_ptr.vmem [resolvable:$true] %s386_s29 }
   0x7   : > { %s410_s14 = sshll.u32 %s2265_s30, 4  ;;  %s2266_s16 = smov [#allocation2]   ;;  %s2360_s14 = int_to_ptr.vmem [resolvable:$true] %s410_s14 }
   0x8   : > { %p1997_p4 = pneg %p2354_p3  ;;  %s358_s17 = sshll.u32 %s2266_s16, 4  ;;  %s2368_s17 = int_to_ptr.vmem [resolvable:$true] %s358_s17 }
   0x9   : > { %s2267_s18 = smov [#allocation6]   ;;  %s2125_s21 = scalar_lea.vmem %s387_s29, 3072 }
   0xa   : > { %p2364_p5 = pnand %p2013_p2, %p1997_p4  ;;  %s2370_s19 = sshll.u32 %s2267_s18, 4  ;;  %s401_s19 = int_to_ptr.vmem [resolvable:$true] %s2370_s19 }
   0xb   : > { %p2126_p7 = scmp.ne.s32.totalorder %s387_s29, %s2125_s21  ;;  %p2133_p10 = scmp.lt.s32.totalorder %s387_s29, %s387_s29 }
   0xc   : > { %p2374_p6 = pneg %p2364_p5  ;;  %p2134_p11 = scmp.lt.s32.totalorder %s2125_s21, %s2125_s21 }
   0xe   : > { %p2128_p8 = pnand %p2126_p7, %p2374_p6  ;;  %p2135_p12 = por %p2134_p11, %p2133_p10 }
  0x10   : > { %p2129_p9 = pneg %p2128_p8 }
  0x12   : > { %p2136_p13 = pnand %p2135_p12, %p2129_p9 }
  0x14   : > { %2139 = shalt.err (!%p2136_p13)
}
  0x15   : > { %s2268_s22 = smov 64   ;;  %s2269_s23 = smov 4  }
  0x16   : > { %2003 = dma.hbm_to_vmem [thread:$0]  (!%p2364_p5), %s2597_s8, 3072, %s387_s29, [#allocation5], %s2268_s22, %s2268_s22, %s2269_s23  }
  0x17   : > { %s2151_s30 = scalar_lea.vmem %s2360_s14, 1024  ;;  %p2159_p7 = scmp.lt.s32.totalorder %s2360_s14, %s2360_s14 }
  0x18   : > { %p2152_p0 = scmp.ne.s32.totalorder %s2360_s14, %s2151_s30  ;;  %p2160_p8 = scmp.lt.s32.totalorder %s2151_s30, %s2151_s30 }
  0x1a   : > { %p2154_p1 = pnand %p2152_p0, %p2374_p6  ;;  %p2161_p9 = por %p2160_p8, %p2159_p7 }
  0x1c   : > { %p2155_p4 = pneg %p2154_p1 }
  0x1e   : > { %p2162_p10 = pnand %p2161_p9, %p2155_p4 }
  0x20   : > { %2165 = shalt.err (!%p2162_p10)
}
  0x21   : > { %2009 = dma.hbm_to_vmem [thread:$0]  (!%p2364_p5), %s2599_s10, 1024, %s2360_s14, [#allocation8], %s2268_s22, %s2268_s22, %s2269_s23  }
  0x22   : > { %s2177_s29 = scalar_lea.vmem %s2368_s17, 3072  ;;  %p2185_p0 = scmp.lt.s32.totalorder %s2368_s17, %s2368_s17 }
  0x23   : > { %p2178_p11 = scmp.ne.s32.totalorder %s2368_s17, %s2177_s29  ;;  %p2186_p1 = scmp.lt.s32.totalorder %s2177_s29, %s2177_s29 }
  0x25   : > { %p2180_p12 = pnand %p2178_p11, %p2374_p6  ;;  %p2187_p4 = por %p2186_p1, %p2185_p0 }
  0x27   : > { %p2181_p13 = pneg %p2180_p12 }
  0x29   : > { %p2188_p7 = pnand %p2187_p4, %p2181_p13 }
  0x2b   : > { %2191 = shalt.err (!%p2188_p7)
}
  0x2c   : > { %2000 = dma.hbm_to_vmem [thread:$0]  (!%p2364_p5), %s2591_s2, 3072, %s2368_s17, [#allocation3], %s2268_s22, %s2268_s22, %s2269_s23  }
  0x2d   : > { %s2203_s14 = scalar_lea.vmem %s401_s19, 16  ;;  %s2210_s28 = scalar_lea.vmem %s401_s19, 32 }
  0x2e   : > { %p2204_p8 = scmp.ne.s32.totalorder %s401_s19, %s2203_s14  ;;  %p2211_p11 = scmp.lt.s32.totalorder %s401_s19, %s401_s19 }
  0x2f   : > { %p2212_p12 = scmp.lt.s32.totalorder %s2210_s28, %s2203_s14 }
  0x30   : > { %p2206_p9 = pnand %p2204_p8, %p2374_p6 }
  0x31   : > { %p2213_p13 = por %p2212_p12, %p2211_p11 }
  0x32   : > { %p2207_p10 = pneg %p2206_p9 }
  0x34   : > { %p2214_p0 = pnand %p2213_p13, %p2207_p10 }
  0x36   : > { %2217 = shalt.err (!%p2214_p0)
}
  0x37   : > { %2006 = dma.hbm_to_vmem [thread:$0]  (!%p2364_p5), %s2598_s9, 16, %s401_s19, [#allocation5]  }
  0x38   : > { %s2270_s17 = smov [#allocation9]  }
  0x39   : > { %s424_s22 = sshll.u32 %s2270_s17, 4  ;;  %s425_s22 = int_to_ptr.vmem [resolvable:$true] %s424_s22 }
  0x3a   : > { %s2229_s23 = scalar_lea.vmem %s425_s22, 16  ;;  %s2236_s18 = scalar_lea.vmem %s425_s22, 32 }
  0x3b   : > { %p2230_p1 = scmp.ne.s32.totalorder %s425_s22, %s2229_s23  ;;  %p2237_p8 = scmp.lt.s32.totalorder %s425_s22, %s425_s22 }
  0x3c   : > { %p2238_p9 = scmp.lt.s32.totalorder %s2236_s18, %s2229_s23 }
  0x3d   : > { %p2232_p4 = pnand %p2230_p1, %p2374_p6 }
  0x3e   : > { %p2239_p10 = por %p2238_p9, %p2237_p8 }
  0x3f   : > { %p2233_p7 = pneg %p2232_p4 }
  0x41   : > { %p2240_p11 = pnand %p2239_p10, %p2233_p7 }
  0x43   : > { %2243 = shalt.err (!%p2240_p11)
}
  0x44   : > { %2012 = dma.hbm_to_vmem [thread:$0]  (!%p2364_p5), %s2600_s11, 16, %s425_s22, [#allocation8]  }
  0x45   : > { %452 = sbr.rel (%p2354_p3) target bundleno = 1110 (0x456), region = 68 }
  0x4a   : > { %2249 = dma.done.wait (%p2013_p2), [#allocation3], 3072  }
  0x4b   : > { %2251 = vsyncadd (%p2013_p2), [#allocation3], 4294964224 }
  0x4c   : > { %2253 = dma.done.wait (%p2013_p2), [#allocation5], 3088  }
  0x4d   : > { %2255 = vsyncadd (%p2013_p2), [#allocation5], 4294964208 }
  0x4e   : > { %2257 = dma.done.wait (%p2013_p2), [#allocation8], 1040  }
  0x4f   : > { %2259 = vsyncadd (%p2013_p2), [#allocation8], 4294966256  ;;  %v2271_v0 = vmov 0.0   ;;  %vm2272_vm0 = vmmov 0   ;;  %v2040_v1 = vld [vmem:[#allocation4 + $0x78] sm:$0xff]   ;;  %v2043_v4 = vld [vmem:[#allocation4 + $0x70] sm:$0xff]  }
  0x50   : > { %1877 = vmatprep.subr.bf16.mxu1 %v2271_v0  ;;  %1893 = vmatprep.mubr.msk.bf16.mxu1 %vm2272_vm0, %v2271_v0  ;;  %v2041_v2 = vld [vmem:[#allocation4 + $0x38] sm:$0xff]   ;;  %v2044_v5 = vld [vmem:[#allocation4 + $0x30] sm:$0xff]   ;;  %v2046_v7 = vld [vmem:[#allocation4 + $0x68] sm:$0xff]   ;;  %p520_p2 = scmp.lt.s32.totalorder %s2349_s26, 1  ;;  %vm552_vm1 = vsmask.f32 256 }
  0x51   : > { %1788 = vmatprep.subr.bf16.mxu0 %v2040_v1  ;;  %v2042_v3 = vld [vmem:[#allocation4 + $0xb8] sm:$0xff]   ;;  %v2045_v6 = vld [vmem:[#allocation4 + $0xb0] sm:$0xff]   ;;  %v2047_v8 = vld [vmem:[#allocation4 + $0x28] sm:$0xff]   ;;  %vm551_vm2 = vcmask 1040384   ;;  %vm558_vm3 = vcmask 1043456   ;;  %vm986_vm7 = vcmask 1047552  }
  0x52   : > { %1789 = vmatpush3.bf16.msra.mxu0 %v2041_v2  ;;  %1878 = vmatpush3.bf16.msra.mxu1 %v2042_v3  ;;  %v2048_v9 = vld [vmem:[#allocation4 + $0xa8] sm:$0xff]   ;;  %v2049_v10 = vld [vmem:[#allocation4 + $0x60] sm:$0xff]   ;;  %v2052_v13 = vld [vmem:[#allocation4 + $0x58] sm:$0xff]   ;;  %s2609_s26 = smov (!%p520_p2, %s2349_s26), 1  ;;  %vm559_vm5 = vsmask.f32 3328 }
  0x53   : > { %1790 = vmatprep.subr.bf16.mxu0 %v2043_v4  ;;  %1879 = vmatprep.subr.bf16.mxu1 %v2271_v0  ;;  %v2050_v11 = vld [vmem:[#allocation4 + $0x20] sm:$0xff]   ;;  %v2053_v14 = vld [vmem:[#allocation4 + $0x18] sm:$0xff]   ;;  %v2055_v16 = vld [vmem:[#allocation4 + $0x50] sm:$0xff]   ;;  %s1692_s27 = sshll.u32 %s2609_s26, 2  ;;  %s1779_s24 = sshll.u32 %s2609_s26, 3 }
  0x54   : > { %v2051_v12 = vld [vmem:[#allocation4 + $0xa0] sm:$0xff]   ;;  %v2054_v15 = vld [vmem:[#allocation4 + $0x98] sm:$0xff]   ;;  %v2056_v17 = vld [vmem:[#allocation4 + $0x10] sm:$0xff]   ;;  %s528_s20 = scalar_lea.vmem %s2590_s1, %s1692_s27  ;;  %s524_s30 = scalar_lea.vmem %s2589_s0, %s1779_s24  ;;  %vm987_vm8 = vsmask.f32 7424 }
  0x55   : > { %v2057_v18 = vld [vmem:[#allocation4 + $0x90] sm:$0xff]   ;;  %v2058_v19 = vld [vmem:[#allocation4 + $0x48] sm:$0xff]   ;;  %v2061_v22 = vld [vmem:[#allocation4 + $0x40] sm:$0xff]   ;;  %s537_s14 = scalar_lea.vmem %s2602_s13, %s1692_s27  ;;  %s533_s23 = scalar_lea.vmem %s2601_s12, %s1779_s24 }
  0x56   : > { %1791 = vmatpush3.bf16.msra.mxu0 %v2044_v5  ;;  %1880 = vmatpush3.bf16.msra.mxu1 %v2045_v6  ;;  %v2059_v20 = vld [vmem:[#allocation4 + $0x8] sm:$0xff]   ;;  %v539_v23 = vld [vmem:[%s528_s20] sm:$0xf]  ;;  %vm2458_vm4 = vmand %vm551_vm2, %vm552_vm1 }
  0x57   : > { %1792 = vmatprep.subr.bf16.mxu0 %v2046_v7  ;;  %1881 = vmatprep.subr.bf16.mxu1 %v2271_v0  ;;  %v2060_v21 = vld [vmem:[#allocation4 + $0x88] sm:$0xff]   ;;  %v1696_v24 = vcombine.low %v539_v23, %v539_v23  ;;  %v2062_v26 = vld [vmem:[#allocation4] sm:$0xff]   ;;  %vm560_vm6 = vmand %vm558_vm3, %vm559_vm5 }
  0x58   : > { %793 = vmatprep.mubr.bf16.mxu0 %v539_v23  ;;  %v2063_v27 = vld [vmem:[#allocation4 + $0x80] sm:$0xff]   ;;  %v2066_v37 = vld [vmem:[#allocation7 + $0x30] sm:$0xff]   ;;  %v2067_v38 = vld [vmem:[#allocation7 + $0x28] sm:$0xff]  }
  0x59   : > { %v544_v28 = vshrl.u32 %v1696_v24, 16  ;;  %v547_v29 = vshll.u32 %v1696_v24, 16  ;;  %v2065_v32 = vld [vmem:[#allocation7 + $0x38] sm:$0xff]   ;;  %v2068_v39 = vld [vmem:[#allocation7 + $0x20] sm:$0xff]   ;;  %v2071_v42 = vld [vmem:[#allocation7 + $0x10] sm:$0xff]  }
  0x5a   : > { %1793 = vmatpush3.bf16.msra.mxu0 %v2047_v8  ;;  %1882 = vmatpush3.bf16.msra.mxu1 %v2048_v9  ;;  %v2069_v40 = vld [vmem:[#allocation7 + $0x18] sm:$0xff]   ;;  %v2073_v44 = vld [vmem:[#allocation2 + $0x70] sm:$0xff]   ;;  %v2076_v47 = vld [vmem:[#allocation2 + $0x68] sm:$0xff]  }
  0x5b   : > { %1794 = vmatprep.subr.bf16.mxu0 %v2049_v10  ;;  %1883 = vmatprep.subr.bf16.mxu1 %v2271_v0  ;;  %v546_v30 = vrot.slane %v544_v28, 7  ;;  %v555_v31 = vrot.slane %v547_v29, 1  ;;  %v2070_v41 = vld [vmem:[#allocation2 + $0x78] sm:$0xff]   ;;  %v2074_v45 = vld [vmem:[#allocation7 + $0x8] sm:$0xff]   ;;  %v2077_v48 = vld [vmem:[#allocation7] sm:$0xff]  }
  0x5c   : > { %v2072_v43 = vld [vmem:[#allocation2 + $0x38] sm:$0xff]   ;;  %v2075_v46 = vld [vmem:[#allocation2 + $0x30] sm:$0xff]   ;;  %v2078_v49 = vld [vmem:[#allocation2 + $0x28] sm:$0xff]  }
  0x5d   : > { %v549_v33 = vor.u32 %v547_v29, %v546_v30  ;;  %v556_v34 = vor.u32 %v555_v31, %v544_v28  ;;  %v2079_v50 = vld [vmem:[#allocation2 + $0x60] sm:$0xff]   ;;  %v2082_v52 = vld [vmem:[#allocation2 + $0x58] sm:$0xff]   ;;  %v2085_v54 = vld [vmem:[#allocation2 + $0x50] sm:$0xff]  }
  0x5e   : > { %1795 = vmatpush3.bf16.msra.mxu0 %v2050_v11  ;;  %1884 = vmatpush3.bf16.msra.mxu1 %v2051_v12  ;;  %v2080_v51 = vld [vmem:[#allocation2 + $0x20] sm:$0xff]   ;;  %v2083_v53 = vld [vmem:[#allocation2 + $0x18] sm:$0xff]   ;;  %v2086_v55 = vld [vmem:[#allocation2 + $0x10] sm:$0xff]  }
  0x5f   : > { %1796 = vmatprep.subr.bf16.mxu0 %v2052_v13  ;;  %1885 = vmatprep.subr.bf16.mxu1 %v2271_v0  ;;  %v554_v35 = vsel %vm2458_vm4, 0, %v549_v33  ;;  %v561_v36 = vsel %vm560_vm6, %v556_v34, 0  ;;  %v2088_v56 = vld [vmem:[#allocation2 + $0x48] sm:$0xff]   ;;  %v2094_v58 = vld [vmem:[%s524_s30] sm:$0xff]   ;;  %v2093_v23 = vld [vmem:[#allocation2 + $0x98] sm:$0xff]  }
  0x60   : > { %v2089_v57 = vld [vmem:[#allocation2 + $0x8] sm:$0xff]   ;;  %v2091_v59 = vld [vmem:[#allocation2 + $0x40] sm:$0xff]   ;;  %v975_v60 = vshrl.u32 %v2094_v58, 16  ;;  %v978_v63 = vshll.u32 %v2094_v58, 16  ;;  %v2095_v24 = vld [vmem:[#allocation2 + $0x90] sm:$0xff]  }
  0x61   : > { %v2092_v61 = vld [vmem:[#allocation2] sm:$0xff]   ;;  %v2096_v25 = vld [vmem:[#allocation2 + $0x88] sm:$0xff]   ;;  %vm988_vm9 = vmand %vm986_vm7, %vm987_vm8 }
  0x62   : > { %1797 = vmatpush3.bf16.msra.mxu0 %v2053_v14  ;;  %1886 = vmatpush3.bf16.msra.mxu1 %v2054_v15  ;;  %v977_v62 = vrot.slane %v975_v60, 7  ;;  %v983_v3 = vrot.slane %v978_v63, 1  ;;  %v1697_v7 = vld [vmem:[#allocation6] ss:$0 sm:$0xff]  ;;  %v2098_v28 = vld [vmem:[%s2593_s4 + $0x38] sm:$0xff]   ;;  %v2099_v29 = vld [vmem:[%s2593_s4 + $0x30] sm:$0xff]  }
  0x63   : > { %1798 = vmatprep.subr.bf16.mxu0 %v2055_v16  ;;  %1887 = vmatprep.subr.bf16.mxu1 %v2271_v0  ;;  %v2100_v30 = vld [vmem:[%s2593_s4 + $0x28] sm:$0xff]   ;;  %v2101_v31 = vld [vmem:[%s2593_s4 + $0x20] sm:$0xff]   ;;  %v2103_v33 = vld [vmem:[%s2593_s4 + $0x10] sm:$0xff]  }
  0x64   : > { %v980_v1 = vor.u32 %v978_v63, %v977_v62  ;;  %v984_v4 = vor.u32 %v983_v3, %v975_v60  ;;  %v2104_v34 = vld [vmem:[%s2593_s4 + $0x8] sm:$0xff]   ;;  %v2110_v62 = vld [vmem:[%s2595_s6 + $0x18] sm:$0xff]  }
  0x66   : > { %1799 = vmatpush3.bf16.msra.mxu0 %v2056_v17  ;;  %1888 = vmatpush3.bf16.msra.mxu1 %v2057_v18  ;;  %v982_v2 = vsel %vm2458_vm4, 0, %v980_v1  ;;  %v2081_v18 = vld [vmem:[#allocation2 + $0xb8] sm:$0xff]  }
  0x67   : > { %1800 = vmatprep.subr.bf16.mxu0 %v2058_v19  ;;  %1889 = vmatprep.subr.bf16.mxu1 %v2271_v0 }
  0x6a   : > { %1801 = vmatpush3.bf16.msra.mxu0 %v2059_v20  ;;  %1890 = vmatpush3.bf16.msra.mxu1 %v2060_v21  ;;  %v2084_v20 = vld [vmem:[#allocation2 + $0xb0] sm:$0xff]   ;;  %v2087_v21 = vld [vmem:[#allocation2 + $0xa8] sm:$0xff]  }
  0x6b   : > { %1802 = vmatprep.subr.bf16.mxu0 %v2061_v22  ;;  %1891 = vmatprep.subr.bf16.mxu1 %v2271_v0  ;;  %v2090_v22 = vld [vmem:[#allocation2 + $0xa0] sm:$0xff]  }
  0x6e   : > { %1803 = vmatpush3.bf16.msra.mxu0 %v2062_v26  ;;  %1892 = vmatpush3.bf16.msra.mxu1 %v2063_v27  ;;  %v2097_v26 = vld [vmem:[#allocation2 + $0x80] sm:$0xff]   ;;  %v989_v27 = vsel %vm988_vm9, %v984_v4, 0 }
  0x6f   : > { %1897 = vmatprep.subr.bf16.mxu0 %v2271_v0  ;;  %1828 = vmatprep.subr.bf16.mxu1 %v2070_v41 }
  0x71   : > { %794 = vmatmul.mubr.bf16.vlgmr.msra.gmra.mxu0 %v554_v35  ;;  %1894 = vmatmul.mubr.bf16.vlgmr.msra.gmra.mxu1 %v561_v36  ;;  %v2105_v35 = vld [vmem:[%s2593_s4] sm:$0xff]  }
  0x72   : > { %1898 = vmatpush3.bf16.msra.mxu0 %v2065_v32  ;;  %1913 = vmatprep.mubr.msk.bf16.mxu0 %vm2272_vm0, %v2271_v0  ;;  %v2102_v32 = vld [vmem:[%s2593_s4 + $0x18] sm:$0xff]   ;;  %v1722_v36 = vld [vmem:[#allocation9] ss:$0 sm:$0xff] }
  0x73   : > { %1899 = vmatprep.subr.bf16.mxu0 %v2271_v0  ;;  %1829 = vmatpush3.bf16.msra.mxu1 %v2072_v43 }
  0x74   : > { %1830 = vmatprep.subr.bf16.mxu1 %v2073_v44  ;;  %1222 = vmatprep.mubr.bf16.mxu1 %v2094_v58 }
  0x76   : > { %1900 = vmatpush3.bf16.msra.mxu0 %v2066_v37 }
  0x77   : > { %1901 = vmatprep.subr.bf16.mxu0 %v2271_v0  ;;  %1831 = vmatpush3.bf16.msra.mxu1 %v2075_v46 }
  0x78   : > { %1832 = vmatprep.subr.bf16.mxu1 %v2076_v47  ;;  %v2106_v47 = vld [vmem:[%s2595_s6 + $0x38] sm:$0xff]  }
  0x7a   : > { %1902 = vmatpush3.bf16.msra.mxu0 %v2067_v38 }
  0x7b   : > { %1903 = vmatprep.subr.bf16.mxu0 %v2271_v0  ;;  %1833 = vmatpush3.bf16.msra.mxu1 %v2078_v49  ;;  %v2107_v49 = vld [vmem:[%s2595_s6 + $0x30] sm:$0xff]  }
  0x7c   : > { %1834 = vmatprep.subr.bf16.mxu1 %v2079_v50 }
  0x7e   : > { %1904 = vmatpush3.bf16.msra.mxu0 %v2068_v39 }
  0x7f   : > { %1905 = vmatprep.subr.bf16.mxu0 %v2271_v0  ;;  %1835 = vmatpush3.bf16.msra.mxu1 %v2080_v51  ;;  %v2108_v51 = vld [vmem:[%s2595_s6 + $0x28] sm:$0xff]  }
  0x80   : > { %1836 = vmatprep.subr.bf16.mxu1 %v2082_v52 }
  0x82   : > { %1906 = vmatpush3.bf16.msra.mxu0 %v2069_v40 }
  0x83   : > { %1907 = vmatprep.subr.bf16.mxu0 %v2271_v0  ;;  %1837 = vmatpush3.bf16.msra.mxu1 %v2083_v53  ;;  %v1732_v53 = vld [vmem:[%s2592_s3] ss:$0 sm:$0xff] }
  0x84   : > { %1838 = vmatprep.subr.bf16.mxu1 %v2085_v54 }
  0x86   : > { %1908 = vmatpush3.bf16.msra.mxu0 %v2071_v42 }
  0x87   : > { %1909 = vmatprep.subr.bf16.mxu0 %v2271_v0  ;;  %1839 = vmatpush3.bf16.msra.mxu1 %v2086_v55 }
  0x88   : > { %1840 = vmatprep.subr.bf16.mxu1 %v2088_v56  ;;  %v2109_v56 = vld [vmem:[%s2595_s6 + $0x20] sm:$0xff]  }
  0x8a   : > { %1910 = vmatpush3.bf16.msra.mxu0 %v2074_v45 }
  0x8b   : > { %1911 = vmatprep.subr.bf16.mxu0 %v2271_v0  ;;  %1841 = vmatpush3.bf16.msra.mxu1 %v2089_v57 }
  0x8c   : > { %1842 = vmatprep.subr.bf16.mxu1 %v2091_v59 }
  0x8e   : > { %1912 = vmatpush3.bf16.msra.mxu0 %v2077_v48 }
  0x8f   : > { %1917 = vmatprep.subr.bf16.mxu0 %v2271_v0  ;;  %1843 = vmatpush3.bf16.msra.mxu1 %v2092_v61 }
  0x90   : > { %1937 = vmatprep.subr.bf16.mxu1 %v2271_v0 }
  0x92   : > { %1223 = vmatmul.mubr.bf16.vlgmr.msra.gmra.mxu1 %v982_v2 }
  0x93   : > { %1953 = vmatprep.mubr.msk.bf16.mxu1 %vm2272_vm0, %v2271_v0  ;;  %1938 = vmatpush3.bf16.msra.mxu1 %v2098_v28 }
  0x94   : > { %1939 = vmatprep.subr.bf16.mxu1 %v2271_v0 }
  0x97   : > { %1940 = vmatpush3.bf16.msra.mxu1 %v2099_v29 }
  0x98   : > { %1941 = vmatprep.subr.bf16.mxu1 %v2271_v0 }
  0x9b   : > { %1942 = vmatpush3.bf16.msra.mxu1 %v2100_v30 }
  0x9c   : > { %1943 = vmatprep.subr.bf16.mxu1 %v2271_v0 }
  0x9f   : > { %1944 = vmatpush3.bf16.msra.mxu1 %v2101_v31 }
  0xa0   : > { %1945 = vmatprep.subr.bf16.mxu1 %v2271_v0 }
  0xa3   : > { %1946 = vmatpush3.bf16.msra.mxu1 %v2102_v32 }
  0xa4   : > { %1947 = vmatprep.subr.bf16.mxu1 %v2271_v0 }
  0xa7   : > { %1948 = vmatpush3.bf16.msra.mxu1 %v2103_v33 }
  0xa8   : > { %1949 = vmatprep.subr.bf16.mxu1 %v2271_v0 }
  0xab   : > { %1950 = vmatpush3.bf16.msra.mxu1 %v2104_v34 }
  0xac   : > { %1951 = vmatprep.subr.bf16.mxu1 %v2271_v0 }
  0xaf   : > { %1952 = vmatpush3.bf16.msra.mxu1 %v2105_v35 }
 0x131   : > { %v1804_v5 = vpop.f32.mrf.mxu0  ;;  %v835_v6 = vpop.f32.mrf.mxu1 }
 0x133   : > { %v1805_v8 = vpop.f32.mrf.mxu0  ;;  %v1895_v10 = vpop.f32.mrf.mxu1 }
 0x134   : > { %v1806_v9 = vadd.f32 %v1805_v8, %v1804_v5  ;;  %v2111_v5 = vld [vmem:[%s2595_s6 + $0x10] sm:$0xff]   ;;  %v959_v8 = vlaneseq }
 0x135   : > { %v1807_v11 = vpop.f32.mrf.mxu0  ;;  %v838_v13 = vpop.f32.mrf.mxu1 }
 0x136   : > { %v796_v12 = vadd.f32 %v1806_v9, %v1697_v7  ;;  %v2113_v7 = vld [vmem:[%s2595_s6] sm:$0xff]   ;;  %v960_v9 = vand.u32 127, %v959_v8 }
 0x137   : > { %v1808_v14 = vpop.f32.mrf.mxu0  ;;  %v1896_v16 = vpop.f32.mrf.mxu1  ;;  %v1757_v13 = vld [vmem:[%s2594_s5] ss:$0 sm:$0xff] }
 0x138   : > { %v836_v15 = vadd.f32 %v835_v6, %v796_v12  ;;  %v2112_v6 = vld [vmem:[%s2595_s6 + $0x8] sm:$0xff]   ;;  %vm961_vm10 = vcmp.eq.s32.totalorder %v960_v9, 16  ;;  %vm963_vm11 = vcmp.eq.s32.totalorder %v960_v9, 17 }
 0x13a   : > { %v841_v17 = vmax.f32 %v836_v15, 0.0 }
 0x13c   : > { %v842_v19 = vpack.c.bf16 %v841_v17, %v841_v17 }
 0x13e   : > { %1914 = vmatmul.mubr.bf16.vlgmr.msra.gmra.mxu0 %v842_v19 }
 0x13f   : > { %1918 = vmatpush3.bf16.msra.mxu0 %v2081_v18  ;;  %1933 = vmatprep.mubr.msk.bf16.mxu0 %vm2272_vm0, %v2271_v0 }
 0x140   : > { %1919 = vmatprep.subr.bf16.mxu0 %v2271_v0 }
 0x143   : > { %1920 = vmatpush3.bf16.msra.mxu0 %v2084_v20 }
 0x144   : > { %1921 = vmatprep.subr.bf16.mxu0 %v2271_v0 }
 0x147   : > { %1922 = vmatpush3.bf16.msra.mxu0 %v2087_v21 }
 0x148   : > { %1923 = vmatprep.subr.bf16.mxu0 %v2271_v0 }
 0x14b   : > { %1924 = vmatpush3.bf16.msra.mxu0 %v2090_v22 }
 0x14c   : > { %1925 = vmatprep.subr.bf16.mxu0 %v2271_v0 }
 0x14f   : > { %1926 = vmatpush3.bf16.msra.mxu0 %v2093_v23 }
 0x150   : > { %1927 = vmatprep.subr.bf16.mxu0 %v2271_v0 }
 0x152   : > { %v1844_v45 = vpop.f32.mrf.mxu1 }
 0x153   : > { %1928 = vmatpush3.bf16.msra.mxu0 %v2095_v24  ;;  %v1766_v24 = vld [vmem:[%s2596_s7] ss:$0 sm:$0xff] }
 0x154   : > { %1929 = vmatprep.subr.bf16.mxu0 %v2271_v0  ;;  %v1845_v46 = vpop.f32.mrf.mxu1 }
 0x155   : > { %v1846_v52 = vadd.f32 %v1845_v46, %v1844_v45 }
 0x156   : > { %v1847_v48 = vpop.f32.mrf.mxu1 }
 0x157   : > { %1930 = vmatpush3.bf16.msra.mxu0 %v2096_v25  ;;  %v1225_v57 = vadd.f32 %v1846_v52, %v1732_v53 }
 0x158   : > { %1931 = vmatprep.subr.bf16.mxu0 %v2271_v0  ;;  %v1848_v50 = vpop.f32.mrf.mxu1 }
 0x159   : > { %v1849_v54 = vadd.f32 %v1848_v50, %v1847_v48 }
 0x15b   : > { %1932 = vmatpush3.bf16.msra.mxu0 %v2097_v26  ;;  %v1228_v60 = vadd.f32 %v1849_v54, %v1732_v53 }
 0x15c   : > { %1957 = vmatprep.subr.bf16.mxu0 %v2271_v0 }
 0x15e   : > { %1934 = vmatmul.mubr.bf16.vlgmr.msra.gmra.mxu0 %v989_v27 }
 0x15f   : > { %1973 = vmatprep.mubr.msk.bf16.mxu0 %vm2272_vm0, %v2271_v0  ;;  %1958 = vmatpush3.bf16.msra.mxu0 %v2106_v47 }
 0x160   : > { %1959 = vmatprep.subr.bf16.mxu0 %v2271_v0 }
 0x163   : > { %1960 = vmatpush3.bf16.msra.mxu0 %v2107_v49 }
 0x164   : > { %1961 = vmatprep.subr.bf16.mxu0 %v2271_v0 }
 0x167   : > { %1962 = vmatpush3.bf16.msra.mxu0 %v2108_v51 }
 0x168   : > { %1963 = vmatprep.subr.bf16.mxu0 %v2271_v0 }
 0x16b   : > { %1964 = vmatpush3.bf16.msra.mxu0 %v2109_v56 }
 0x16c   : > { %1965 = vmatprep.subr.bf16.mxu0 %v2271_v0 }
 0x16f   : > { %1966 = vmatpush3.bf16.msra.mxu0 %v2110_v62 }
 0x170   : > { %1967 = vmatprep.subr.bf16.mxu0 %v2271_v0 }
 0x173   : > { %1968 = vmatpush3.bf16.msra.mxu0 %v2111_v5 }
 0x174   : > { %1969 = vmatprep.subr.bf16.mxu0 %v2271_v0 }
 0x177   : > { %1970 = vmatpush3.bf16.msra.mxu0 %v2112_v6 }
 0x178   : > { %1971 = vmatprep.subr.bf16.mxu0 %v2271_v0 }
 0x17b   : > { %1972 = vmatpush3.bf16.msra.mxu0 %v2113_v7 }
 0x1fe   : > { %v948_v37 = vpop.f32.mrf.mxu0 }
 0x1ff   : > { %v949_v38 = vadd.f32 %v1722_v36, %v948_v37 }
 0x200   : > { %v1915_v39 = vpop.f32.mrf.mxu0 }
 0x201   : > { %v954_v40 = vpack.c.bf16 %v949_v38, %v949_v38 }
 0x202   : > { %v951_v41 = vpop.f32.mrf.mxu0 }
 0x203   : > { %v955_v42 = vunpack.c.l.bf16 %v954_v40 }
 0x204   : > { %v1916_v43 = vpop.f32.mrf.mxu0 }
 0x205   : > { %v956_v44 = vmul.f32 %v955_v42, %v955_v42  ;;  %v962_v10 = vsel %vm961_vm10, 1.0, %v955_v42 }
 0x207   : > { %957 = vadd.xlane.f32.xlu1 %v956_v44 }
 0x21e   : > { %v1265_v55 = vpop.f32.mrf.mxu0 }
 0x21f   : > { %v1266_v59 = vadd.f32 %v1265_v55, %v1225_v57 }
 0x220   : > { %v1935_v58 = vpop.f32.mrf.mxu0 }
 0x221   : > { %v1272_v2 = vmax.f32 %v1266_v59, 0.0 }
 0x222   : > { %v1268_v61 = vpop.f32.mrf.mxu0 }
 0x223   : > { %v1269_v63 = vadd.f32 %v1268_v61, %v1228_v60 }
 0x224   : > { %v1936_v1 = vpop.f32.mrf.mxu0 }
 0x225   : > { %v1273_v3 = vmax.f32 %v1269_v63, 0.0 }
 0x227   : > { %v1274_v4 = vpack.c.bf16 %v1273_v3, %v1272_v2 }
 0x229   : > { %1954 = vmatmul.mubr.bf16.vlgmr.msra.gmra.mxu1 %v1274_v4 }
 0x290   : > { %v958_v11 = vpop.xlane.xlu1 %957 }
 0x291   : > { %v964_v12 = vsel %vm963_vm11, %v958_v11, %v962_v10 }
 0x292   : > { %v965_v0 = vpack.c.bf16 %v964_v12, %v964_v12 }
 0x294   : > { %966 = vst [vmem:[%s537_s14] sm:$0xf] %v965_v0 }
 0x2e9   : > { %v1380_v14 = vpop.f32.mrf.mxu1 }
 0x2ea   : > { %v1381_v16 = vadd.f32 %v1757_v13, %v1380_v14 }
 0x2eb   : > { %v1955_v15 = vpop.f32.mrf.mxu1 }
 0x2ec   : > { %v1387_v20 = vmax.f32 %v1381_v16, 0.0 }
 0x2ed   : > { %v1383_v17 = vpop.f32.mrf.mxu1 }
 0x2ee   : > { %v1384_v18 = vadd.f32 %v1757_v13, %v1383_v17 }
 0x2ef   : > { %v1956_v19 = vpop.f32.mrf.mxu1 }
 0x2f0   : > { %v1388_v21 = vmax.f32 %v1384_v18, 0.0 }
 0x2f2   : > { %v1389_v22 = vpack.c.bf16 %v1388_v21, %v1387_v20 }
 0x2f4   : > { %1974 = vmatmul.mubr.bf16.vlgmr.msra.gmra.mxu0 %v1389_v22 }
 0x3b4   : > { %v1495_v23 = vpop.f32.mrf.mxu0 }
 0x3b5   : > { %v1496_v27 = vadd.f32 %v1766_v24, %v1495_v23 }
 0x3b6   : > { %v1975_v25 = vpop.f32.mrf.mxu0 }
 0x3b8   : > { %v1498_v26 = vpop.f32.mrf.mxu0 }
 0x3b9   : > { %v1499_v28 = vadd.f32 %v1766_v24, %v1498_v26 }
 0x3ba   : > { %v1976_v29 = vpop.f32.mrf.mxu0 }
 0x3bb   : > { %v1502_v30 = vpack.c.bf16 %v1499_v28, %v1496_v27 }
 0x3bd   : > { %v1503_v31 = vunpack.c.l.bf16 %v1502_v30  ;;  %v1504_v33 = vunpack.c.h.bf16 %v1502_v30 }
 0x3bf   : > { %v1505_v32 = vmul.f32 %v1503_v31, %v1503_v31  ;;  %v1506_v34 = vmul.f32 %v1504_v33, %v1504_v33 }
 0x3c1   : > { %1507 = vadd.xlane.f32.xlu0 %v1505_v32 }
 0x3c5   : > { %1509 = vadd.xlane.f32.xlu0 %v1506_v34 }
 0x44a   : > { %v1508_v35 = vpop.xlane.xlu0 %1507 }
 0x44b   : > { %v1511_v36 = vmul.f32 -0.5, %v1508_v35 }
 0x44d   : > { %v1513_v38 = vsel %vm961_vm10, %v1511_v36, %v1503_v31 }
 0x44e   : > { %v1510_v37 = vpop.xlane.xlu0 %1509  ;;  %v1515_v41 = vsel %vm963_vm11, -0.5, %v1513_v38 }
 0x44f   : > { %v1512_v39 = vmul.f32 -0.5, %v1510_v37 }
 0x451   : > { %v1514_v40 = vsel %vm961_vm10, %v1512_v39, %v1504_v33 }
 0x452   : > { %v1516_v42 = vsel %vm963_vm11, -0.5, %v1514_v40 }
 0x453   : > { %v1786_v43 = vpack.c.bf16 %v1516_v42, %v1515_v41 }
 0x455   : > { %1787 = vst [vmem:[%s533_s23] sm:$0xff] %v1786_v43  }
 0x456 PF: > { %s27_s25 = sadd.s32 1, %s2262_s25  }
 0x457   : > { %p24_p3 = scmp.ge.s32.totalorder %s27_s25, 4  }
 0x459   :  { %26 = sbr.rel (!%p24_p3) target bundleno = 3 (0x3), region = 134 }
 0x45e   :  { %1562 = vsyncpa [#allocation3], 1 }
 0x45f   :  { %1564 = vsyncpa [#allocation3 + $0x1], 1 }
 0x460   :  { %1565 = vsyncpa [#allocation5], 1 }
 0x461   :  { %1566 = vsyncpa [#allocation8], 1 }

</bundles_post_ra>
